<compile_context>
chip_gen: v7x
topology: tpu7x:2x2x1
jax: 0.10.0
libtpu: 0.0.40
codegen_flags: <defaults>
</compile_context>

<pallas_src>
import math

import jax
import jax.numpy as jnp
from jax.experimental import pallas as pl
from jax.experimental.pallas import tpu as pltpu

C = 1.0
SQRT_C = math.sqrt(C)
INV_SQRT_C = 1.0 / SQRT_C
MIN_NORM = 1e-15


def _artanh(x):
    x = jnp.clip(x, -1.0 + 1e-7, 1.0 - 1e-7)
    return 0.5 * (jnp.log1p(x) - jnp.log1p(-x))


# ---------------------------------------------------------------------------
# Kernel: out = artanh(sqrt(c)*||x||) / (sqrt(c)*||x||) * x   (row-wise)
# ---------------------------------------------------------------------------
def logzero_kernel(x_ref, o_ref):
    xf = x_ref[...].astype(jnp.float32)                 # native-dtype load, f32 math
    sq = jnp.sum(xf * xf, axis=-1, keepdims=True)       # one XLU row-reduce
    sq = jnp.maximum(sq, MIN_NORM * MIN_NORM)           # ||x|| clamp (geoopt MIN_NORM)
    norm = jnp.sqrt(sq)
    # scale = artanh(sqrt(c)*||x||) / (sqrt(c)*||x||)   (exact; EUP work is per-row)
    scale = _artanh(SQRT_C * norm) * (jax.lax.rsqrt(sq) * INV_SQRT_C)
    o_ref[...] = (xf * scale).astype(o_ref.dtype)       # downcast on the store


# ---------------------------------------------------------------------------
# Wrapper
# ---------------------------------------------------------------------------
def logzero_forward(x, *, target_block_bytes=2 << 20, min_grid=4):
    """LogZero.forward: Poincare-ball logmap0 over the last axis of x."""
    orig_shape = x.shape
    d = orig_shape[-1]
    x2 = x.reshape(-1, d)                       # collapse leading dims (layout-only)
    b = x2.shape[0]
    itemsize = jnp.dtype(x.dtype).itemsize

    # Min sublane tile for this dtype: (8,128) f32 / (16,128) bf16 / (32,128) 8-bit.
    sub = max(8, 32 // itemsize)

    if b <= sub:
        tile = b                                # single full-extent block
    else:
        # Tile rows from a VMEM block budget (in+out double-buffered = 4x block).
        tile = max(sub, target_block_bytes // (d * itemsize))
        # Keep at least `min_grid` grid steps so "parallel" can shard across TCs.
        tile = min(tile, max(sub, pl.cdiv(b, min_grid)))
        tile = max(sub, min((tile // sub) * sub, b))

    grid = pl.cdiv(b, tile)                     # ragged last block handled by masking

    out = pl.pallas_call(
        logzero_kernel,
        out_shape=jax.ShapeDtypeStruct((b, d), x.dtype),
        grid=(grid,),
        in_specs=[pl.BlockSpec((tile, d), lambda i: (i, 0))],
        out_specs=pl.BlockSpec((tile, d), lambda i: (i, 0)),
        compiler_params=pltpu.CompilerParams(
            dimension_semantics=("parallel",),
            vmem_limit_bytes=32 << 20),
    )(x2)

    return out.reshape(orig_shape)


# ---------------------------------------------------------------------------
# Pure-JAX reference (exact divide) for correctness check
# ---------------------------------------------------------------------------
def reference_logmap0(x):
    xf = x.astype(jnp.float32)
    norm = jnp.maximum(
        jnp.sqrt(jnp.sum(xf * xf, axis=-1, keepdims=True)), MIN_NORM)
    return (_artanh(SQRT_C * norm) * xf / (SQRT_C * norm)).astype(x.dtype)


if __name__ == "__main__":
    key = jax.random.PRNGKey(0)
    k1, k2, k3 = jax.random.split(key, 3)

    # Case 1: lane-dense f32, tile divides the batch (16 rows x 128 features).
    x1 = 0.05 * jax.random.normal(k1, (2, 8, 128), dtype=jnp.float32)
    o1 = jax.block_until_ready(logzero_forward(x1))
    r1 = reference_logmap0(x1)
    assert o1.shape == x1.shape
    assert bool(jnp.all(jnp.isfinite(o1)))
    assert bool(jnp.allclose(o1, r1, atol=1e-5, rtol=1e-5))

    # Case 2: ragged batch (60 rows, 8-row tile -> masked tail block, no pad/slice).
    x2 = 0.1 * jax.random.normal(k2, (3, 20, 128), dtype=jnp.float32)
    o2 = jax.block_until_ready(logzero_forward(x2))
    r2 = reference_logmap0(x2)
    assert o2.shape == x2.shape
    assert bool(jnp.allclose(o2, r2, atol=1e-5, rtol=1e-5))

    # Case 3: bf16 I/O (cast folded into the kernel; f32 math in-register).
    x3 = (0.05 * jax.random.normal(k3, (32, 128), dtype=jnp.float32)).astype(jnp.bfloat16)
    o3 = jax.block_until_ready(logzero_forward(x3))
    r3 = reference_logmap0(x3)
    assert o3.dtype == jnp.bfloat16
    assert bool(jnp.allclose(o3.astype(jnp.float32), r3.astype(jnp.float32),
                             atol=2e-2, rtol=2e-2))

    print("KERNEL_OK")
</pallas_src>

<mosaic_0001>
module attributes {stable_mosaic.version = 11 : i64} {
  func.func @logzero_kernel(%arg0: i32, %arg1: memref<8x128xf32, #tpu.memory_space<vmem>>, %arg2: memref<8x128xf32, #tpu.memory_space<vmem>>) attributes {dimension_semantics = [#tpu.dimension_semantics<parallel>], iteration_bounds = array<i64: 2>, scalar_prefetch = 0 : i64, scratch_operands = 0 : i64, tpu.core_type = #tpu.core_type<tc>, window_params = [{transform_indices = @transform_0, window_bounds = array<i64: 8, 128>}, {transform_indices = @transform_1, window_bounds = array<i64: 8, 128>}]} {
    %c0 = arith.constant 0 : index
    %c0_0 = arith.constant 0 : index
    %0 = vector.load %arg1[%c0, %c0_0] : memref<8x128xf32, #tpu.memory_space<vmem>>, vector<8x128xf32>
    %1 = arith.mulf %0, %0 : vector<8x128xf32>
    %cst = arith.constant dense<0.000000e+00> : vector<8xf32>
    %2 = vector.multi_reduction <add>, %1, %cst [1] : vector<8x128xf32> to vector<8xf32>
    %3 = vector.shape_cast %2 : vector<8xf32> to vector<8x1xf32>
    %cst_1 = arith.constant 1.000000e-30 : f32
    %4 = vector.broadcast %cst_1 : f32 to vector<8x1xf32>
    %5 = arith.maximumf %3, %4 : vector<8x1xf32>
    %6 = math.sqrt %5 : vector<8x1xf32>
    %cst_2 = arith.constant 1.000000e+00 : f32
    %7 = vector.broadcast %cst_2 : f32 to vector<8x1xf32>
    %8 = arith.mulf %7, %6 : vector<8x1xf32>
    %cst_3 = arith.constant -0.99999988 : f32
    %cst_4 = arith.constant 0.99999988 : f32
    %9 = vector.broadcast %cst_3 : f32 to vector<8x1xf32>
    %10 = arith.maximumf %9, %8 : vector<8x1xf32>
    %11 = vector.broadcast %cst_4 : f32 to vector<8x1xf32>
    %12 = arith.minimumf %11, %10 : vector<8x1xf32>
    %13 = math.log1p %12 : vector<8x1xf32>
    %cst_5 = arith.constant 0.000000e+00 : f32
    %14 = vector.broadcast %cst_5 : f32 to vector<8x1xf32>
    %15 = arith.subf %14, %12 : vector<8x1xf32>
    %16 = math.log1p %15 : vector<8x1xf32>
    %17 = arith.subf %13, %16 : vector<8x1xf32>
    %cst_6 = arith.constant 5.000000e-01 : f32
    %18 = vector.broadcast %cst_6 : f32 to vector<8x1xf32>
    %19 = arith.mulf %18, %17 : vector<8x1xf32>
    %20 = math.rsqrt %5 : vector<8x1xf32>
    %cst_7 = arith.constant 1.000000e+00 : f32
    %21 = vector.broadcast %cst_7 : f32 to vector<8x1xf32>
    %22 = arith.mulf %20, %21 : vector<8x1xf32>
    %23 = arith.mulf %19, %22 : vector<8x1xf32>
    %24 = vector.broadcast %23 : vector<8x1xf32> to vector<8x128xf32>
    %25 = arith.mulf %0, %24 : vector<8x128xf32>
    %c0_8 = arith.constant 0 : index
    %c0_9 = arith.constant 0 : index
    %26 = vector.load %arg2[%c0_8, %c0_9] : memref<8x128xf32, #tpu.memory_space<vmem>>, vector<8x128xf32>
    tpu.vector_store %arg2[%c0_8, %c0_9], %25 {strides = array<i32>} : memref<8x128xf32, #tpu.memory_space<vmem>>, vector<8x128xf32>,
    return
  }
  func.func @transform_0(%arg0: i32) -> (i32, i32) {
    %c0_i32 = arith.constant 0 : i32
    %c0_i32_0 = arith.constant 0 : i32
    return %arg0, %c0_i32 : i32, i32
  }
  func.func @transform_1(%arg0: i32) -> (i32, i32) {
    %c0_i32 = arith.constant 0 : i32
    %c0_i32_0 = arith.constant 0 : i32
    return %arg0, %c0_i32 : i32, i32
  }
}

</mosaic_0001>

<bundles_post_ra>
// kernel: tpu_custom_call.1
= control target key start
LH: loop header
LB: loop body
LE: loop exit
PB: predicated region body
PF: predicated region fallthrough
CT: control target
= control target key end

     0   :  { %6 = vsyncpa [#allocation3], 0  ;;  %s595_s0 = inlined_call_operand.hbm [shape: f32[16,128], index: 0, kind: input, shape index: {}]   ;;  %s596_s1 = inlined_call_operand.hbm [shape: f32[16,128], index: 1, kind: output, shape index: {}]  }
   0x1   :  { %8 = vsyncpa [#allocation3 + $0x1], 0 }
   0x2   :  { %9 = vsyncpa [#allocation4], 0 }
   0x3   :  { %11 = vsyncpa [#allocation4 + $0x1], 0  ;;  %s430_s6 = smov 0   ;;  %s432_s7 = smov 0  }
   0x4   :  { %s434_s8 = smov 0   ;;  %s436_s9 = smov 0  }
   0x5 LB: > { %s451_s10 = sadd.s32 4294967295, %s416_s9   ;;  %s255_s11 = sadd.s32 4294967294, %s416_s9   ;;  %s416_s9 = sphi %s436_s9, %s611_s9   ;;  %s412_s8 = sphi %s434_s8, %s610_s8   ;;  %s408_s7 = sphi %s432_s7, %s609_s7   ;;  %s404_s6 = sphi %s430_s6, %s608_s6  }
   0x6   : > { %s455_s12 = sadd.s32 1, %s416_s9   ;;  %s24_s13 = sadd.s32 1, %s412_s8 }
   0x7   : > { %s21_s14 = ssub.s32 %s416_s9, %s455_s12  ;;  %p31_p0 = scmp.ne.s32.totalorder %s412_s8, %s408_s7 }
   0x8   : > { %p22_p1 = scmp.eq.s32.totalorder %s21_s14, 0  ;;  %p32_p2 = scmp.eq.s32.totalorder %s416_s9, 0 }
   0x9   : > { %p37_p3 = scmp.ne.s32.totalorder %s408_s7, %s404_s6  ;;  %p38_p4 = scmp.eq.s32.totalorder %s451_s10, 0 }
   0xa   : > { %s467_s15 = scalar_select %p22_p1, %s412_s8, %s24_s13  }
   0xb   : > { %p469_p5 = por %p32_p2, %p31_p0  ;;  %p473_p6 = por %p38_p4, %p37_p3 }
   0xc   : > { %p61_p7 = scmp.eq.s32.totalorder %s451_s10, 1  ;;  %p67_p8 = scmp.eq.s32.totalorder %s255_s11, 1 }
   0xd   : > { %p280_p10 = scmp.lt.s32.totalorder %s416_s9, 2  ;;  %s87_s20 = sand.u32 1, %s412_s8  }
   0xe   : > { %p480_p11 = por %p61_p7, %p31_p0  ;;  %p484_p12 = por %p67_p8, %p37_p3 }
   0xf   : > { %s259_s21 = sshll.u32 %s416_s9, 7  ;;  %s258_s22 = sshll.u32 %s87_s20, 3 }
  0x10   : > { %s600_s18 = scalar_select %p480_p11, 1, 0 }
  0x11   : > { %s601_s19 = scalar_select %p484_p12, 1, 0 }
  0x12   : > { %s493_s25 = scalar_lea.hbm %s595_s0, %s259_s21  ;;  %s91_s26 = scalar_lea.vmem [#allocation2], %s258_s22 }
  0x13   : > { %s98_s27 = sshll.u32 %s91_s26, 4  ;;  %p497_p13 = pnand %p280_p10, %p469_p5  ;;  %s501_s27 = int_to_ptr.vmem [resolvable:$true] %s98_s27 }
  0x14   : > { %s88_s29 = scalar_lea.sflag [#allocation3], %s87_s20  ;;  %s320_s30 = scalar_lea.hbm %s493_s25, 128 }
  0x15   : > { %p321_p2 = scmp.ne.s32.totalorder %s493_s25, %s320_s30  ;;  %p322_p3 = pneg %p497_p13 }
  0x16   : > { %s325_s4 = scalar_lea.hbm %s595_s0, 256  ;;  %p326_p5 = scmp.lt.u32.totalorder %s493_s25, %s595_s0 }
  0x17   : > { %p323_p4 = pnand %p322_p3, %p321_p2  ;;  %p327_p8 = scmp.lt.u32.totalorder %s325_s4, %s320_s30 }
  0x18   : > { %p329_p9 = scmp.lt.u32.totalorder %s320_s30, %s493_s25 }
  0x19   : > { %p324_p7 = pneg %p323_p4  ;;  %p328_p10 = por %p327_p8, %p326_p5 }
  0x1b   : > { %p330_p0 = por %p329_p9, %p328_p10 }
  0x1d   : > { %p331_p1 = pnand %p330_p0, %p324_p7 }
  0x1f   : > { %334 = shalt.err (!%p331_p1)
}
  0x20   : > { %s335_s13 = scalar_lea.vmem %s501_s27, 128  ;;  %s418_s14 = smov [#allocation2]  }
  0x21   : > { %p336_p2 = scmp.ne.s32.totalorder %s501_s27, %s335_s13  ;;  %s340_s16 = sshll.u32 %s418_s14, 4  ;;  %s341_s16 = int_to_ptr.vmem [resolvable:$false] %s340_s16 }
  0x22   : > { %s342_s20 = scalar_lea.vmem %s341_s16, 256  ;;  %p343_p11 = scmp.lt.s32.totalorder %s501_s27, %s341_s16 }
  0x23   : > { %p338_p4 = pnand %p336_p2, %p322_p3  ;;  %p344_p5 = scmp.lt.s32.totalorder %s342_s20, %s335_s13 }
  0x25   : > { %p339_p12 = pneg %p338_p4  ;;  %p345_p8 = por %p344_p5, %p343_p11 }
  0x27   : > { %p346_p9 = pnand %p345_p8, %p339_p12 }
  0x29   : > { %349 = shalt.err (!%p346_p9)
}
  0x2a   : > { %275 = dma.hbm_to_vmem [thread:$0]  (!%p497_p13), %s493_s25, 128, %s501_s27, %s88_s29  }
  0x2b   : > { %p603_p0 = scmp.lt.s32.totalorder %s416_s9, 3  ;;  %p604_p1 = scmp.ge.s32.totalorder %s416_s9, 1 }
  0x2d   : > { %p104_p3 = pnand %p604_p1, %p603_p0 }
  0x2e   : > { %s535_s21 = sand.u32 (!%p104_p3), 1, %s408_s7  }
  0x2f   : > { %107 = sbr.rel (%p104_p3) target bundleno = 259 (0x103), region = 24  ;;  %s261_s22 = sshll.u32 (!%p104_p3), %s535_s21, 3 }
  0x30   : > { %s110_s23 = scalar_lea.sflag (!%p104_p3), [#allocation3], %s535_s21  ;;  %s113_s24 = scalar_lea.vmem (!%p104_p3), [#allocation2], %s261_s22 }
  0x36   : > { %395 = dma.done.wait (%p473_p6), %s110_s23, 128  }
  0x37   : > { %397 = vsyncadd (%p473_p6), %s110_s23, 4294967168  ;;  %v132_v0 = vld [vmem:[%s113_s24] sm:$0xff]  ;;  %s265_s17 = sshll.u32 %s451_s10, 7  ;;  %s131_s25 = scalar_lea.vmem [#allocation5], %s261_s22 }
  0x38   : > { %v133_v1 = vmul.f32 %v132_v0, %v132_v0  ;;  %s185_s26 = sshll.u32 %s131_s25, 4  ;;  %s551_s29 = scalar_lea.hbm %s596_s1, %s265_s17  ;;  %s553_s26 = int_to_ptr.vmem [resolvable:$true] %s185_s26 }
  0x39   : > { %s172_s30 = scalar_lea.sflag [#allocation4], %s535_s21  ;;  %s350_s2 = scalar_lea.vmem %s553_s26, 128 }
  0x3a   : > { %134 = vadd.xlane.f32.xlu0 %v133_v1  ;;  %p351_p6 = scmp.ne.s32.totalorder %s553_s26, %s350_s2  ;;  %p605_p11 = scmp.ne.s32.totalorder %s600_s18, 0 }
  0x3b   : > { %s419_s10 = smov [#allocation5]  }
  0x3c   : > { %p352_p12 = pnand %p351_p6, %p605_p11  ;;  %s354_s3 = sshll.u32 %s419_s10, 4  ;;  %s355_s3 = int_to_ptr.vmem [resolvable:$false] %s354_s3 }
  0x3d   : > { %s356_s4 = scalar_lea.vmem %s355_s3, 256  ;;  %p357_p7 = scmp.lt.s32.totalorder %s553_s26, %s355_s3 }
  0x3e   : > { %p353_p13 = pneg %p352_p12  ;;  %p358_p10 = scmp.lt.s32.totalorder %s356_s4, %s350_s2 }
  0x40   : > { %p359_p2 = por %p358_p10, %p357_p7 }
  0x42   : > { %p360_p4 = pnand %p359_p2, %p353_p13 }
  0xc7   : > { %v135_v2 = vpop.xlane.xlu0 %134 }
  0xc8   : > { %v136_v3 = vmax.f32 %v135_v2, 1e-30 }
  0xca   : > { %314 = vrsqrt.f32 %v136_v3  ;;  %vm139_vm0 = vcmp.eq.f32.partialorder %v136_v3, inf  ;;  %v142_v6 = vand.u32 2147483648, %v136_v3  ;;  %vm141_vm1 = vcmp.eq.f32.partialorder %v136_v3, 0.0 }
  0xd4   : > { %v315_v4 = vpop.eup %314 }
  0xd5   : > { %v138_v5 = vmul.f32 %v315_v4, %v136_v3 }
  0xd7   : > { %v140_v7 = vsel %vm139_vm0, %v136_v3, %v138_v5 }
  0xd8   : > { %v143_v8 = vsel %vm141_vm1, %v142_v6, %v140_v7 }
  0xd9   : > { %v263_v9 = vclamps-f32 %v143_v8, 0.9999999 }
  0xdb   : > { %v146_v10 = vadd.f32 1.0, %v263_v9  ;;  %v155_v11 = vsub.f32 0.0, %v263_v9  ;;  %v149_v13 = vmul.f32 -0.5, %v263_v9  ;;  %v152_v18 = vand.u32 2147483647, %v263_v9 }
  0xdd   : > { %316 = vlog2.f32 %v146_v10  ;;  %v156_v12 = vadd.f32 1.0, %v155_v11  ;;  %v159_v14 = vmul.f32 -0.5, %v155_v11  ;;  %v150_v15 = vadd.f32 1.0, %v149_v13 }
  0xde   : > { %v162_v19 = vand.u32 2147483647, %v155_v11  ;;  %vm153_vm2 = vcmp.lt.f32.partialorder %v152_v18, 0.0004427343 }
  0xdf   : > { %318 = vlog2.f32 %v156_v12  ;;  %v160_v16 = vadd.f32 1.0, %v159_v14  ;;  %v151_v22 = vmul.f32 %v263_v9, %v150_v15 }
  0xe0   : > { %vm163_vm3 = vcmp.lt.f32.partialorder %v162_v19, 0.0004427343 }
  0xe1   : > { %v161_v24 = vmul.f32 %v160_v16, %v155_v11 }
  0xe7   : > { %v317_v17 = vpop.eup %316 }
  0xe8   : > { %v148_v20 = vmul.f32 0.6931472, %v317_v17 }
  0xe9   : > { %v319_v21 = vpop.eup %318 }
  0xea   : > { %v158_v23 = vmul.f32 0.6931472, %v319_v21  ;;  %v154_v25 = vsel %vm153_vm2, %v151_v22, %v148_v20 }
  0xec   : > { %v164_v26 = vsel %vm163_vm3, %v161_v24, %v158_v23 }
  0xed   : > { %v165_v27 = vsub.f32 %v154_v25, %v164_v26 }
  0xef   : > { %v166_v28 = vmul.f32 0.5, %v165_v27 }
  0xf1   : > { %v168_v29 = vmul.f32 %v315_v4, %v166_v28 }
  0xf3   : > { %v169_v30 = vmul.f32 %v168_v29, %v132_v0 }
  0xf5   : > { %170 = vst [vmem:[%s131_s25] sm:$0xff] %v169_v30 }
  0xf6   : > { %363 = shalt.err (!%p360_p4)
}
  0xf7   : > { %s364_s5 = scalar_lea.hbm %s551_s29, 128  ;;  %s368_s14 = scalar_lea.hbm %s596_s1, 256 }
  0xf8   : > { %p365_p5 = scmp.ne.s32.totalorder %s551_s29, %s364_s5  ;;  %p369_p0 = scmp.lt.u32.totalorder %s551_s29, %s596_s1 }
  0xf9   : > { %p370_p1 = scmp.lt.u32.totalorder %s368_s14, %s364_s5  ;;  %p372_p6 = scmp.lt.u32.totalorder %s364_s5, %s551_s29 }
  0xfa   : > { %p366_p8 = pnand %p365_p5, %p605_p11 }
  0xfb   : > { %p371_p3 = por %p370_p1, %p369_p0 }
  0xfc   : > { %p367_p9 = pneg %p366_p8 }
  0xfd   : > { %p373_p12 = por %p372_p6, %p371_p3 }
  0xff   : > { %p374_p13 = pnand %p373_p12, %p367_p9 }
 0x101   : > { %377 = shalt.err (!%p374_p13)
}
 0x102   : > { %270 = dma.vmem_to_hbm [thread:$0]  (%p605_p11), %s553_s26, 128, %s551_s29, %s172_s30  }
 0x103 PF: > { %s197_s21 = sand.u32 1, %s404_s6   ;;  %p606_p7 = scmp.ne.s32.totalorder %s601_s19, 0 }
 0x104   : > { %p607_p10 = scmp.ge.s32.totalorder %s416_s9, 2  ;;  %s198_s22 = scalar_lea.sflag [#allocation4], %s197_s21 }
 0x106   : > { %p277_p2 = pnand %p607_p10, %p606_p7 }
 0x108   : > { %399 = dma.done.wait (!%p277_p2), %s198_s22, 128  }
 0x109   : > { %401 = vsyncadd (!%p277_p2), %s198_s22, 4294967168  ;;  %p14_p4 = scmp.ge.s32.totalorder %s455_s12, 4   ;;  %s608_s6 = smov %s408_s7 }
 0x10a   : > { %s609_s7 = smov %s412_s8  ;;  %s610_s8 = smov %s467_s15 }
 0x10b   : > { %s611_s9 = smov %s455_s12  ;;  %16 = sbr.rel (!%p14_p4) target bundleno = 5 (0x5), region = 69 }
 0x112   :  { %203 = vsyncpa [#allocation3], 1 }
 0x113   :  { %205 = vsyncpa [#allocation3 + $0x1], 1 }
 0x114   :  { %206 = vsyncpa [#allocation4], 1 }
 0x115   :  { %208 = vsyncpa [#allocation4 + $0x1], 1 }

</bundles_post_ra>
